<compile_context>
chip_gen: v6e
topology: v6e:2x2x1
jax: 0.10.0
libtpu: 0.0.40
codegen_flags: <defaults>
</compile_context>

<pallas_src>
import jax
import jax.numpy as jnp
from jax.experimental import pallas as pl
from jax.experimental.pallas import tpu as pltpu


_ROW_GRANULE = 16        # bf16 intermediates pack two rows per sublane
_MAX_BATCH_TILE = 4096   # ~5 MiB double-buffered VMEM -> safe on v5e (16 MiB
                         # default scoped), v6e (32 MiB) and v7x (32 MiB)


def _round_up(n, m):
    return ((n + m - 1) // m) * m


def _tensorcores_per_chip():
    """Best-effort TensorCore count per chip (2 on v7x, 1 on v5e/v6e)."""
    try:
        info = pltpu.get_tpu_info()
    except Exception:
        return 1
    for attr in ("num_cores", "tensorcores_per_chip", "num_tensorcores",
                 "cores_per_chip"):
        n = getattr(info, attr, None)
        if isinstance(n, int) and n > 0:
            return n
    return 1


def mlp_kernel(x_ref, w1_ref, b1_ref, w2_ref, b2_ref, w3_ref, b3_ref, o_ref):
    # Cast the f32 x tile to bf16 in-kernel (free VPU filler; avoids an extra
    # wrapper-side HBM pass over x).  Accumulation stays f32 on the MXU.
    x = x_ref[...].astype(jnp.bfloat16)
    # fc1 + ReLU
    h1 = jnp.dot(x, w1_ref[...], preferred_element_type=jnp.float32)
    h1 = jnp.maximum(h1 + b1_ref[...], 0.0).astype(jnp.bfloat16)
    # fc2 + ReLU
    h2 = jnp.dot(h1, w2_ref[...], preferred_element_type=jnp.float32)
    h2 = jnp.maximum(h2 + b2_ref[...], 0.0).astype(jnp.bfloat16)
    # fc3 (logits, no activation)
    out = jnp.dot(h2, w3_ref[...], preferred_element_type=jnp.float32)
    o_ref[...] = (out + b3_ref[...]).astype(o_ref.dtype)


def phonological_error_classifier(x, params, *, batch_tile=_MAX_BATCH_TILE):
    """Forward pass of the 3-layer MLP as a fused Pallas kernel."""
    w1, b1, w2, b2, w3, b3 = params
    B, in_dim = x.shape
    hid = w1.shape[1]
    out_dim = w3.shape[1]

    # ---- pick the batch tile -------------------------------------------------
    # As large as VMEM comfortably allows; per-grid-step overhead (not MXU or
    # HBM) is the binding cost at these layer sizes.
    tile = min(batch_tile, _MAX_BATCH_TILE, _round_up(B, _ROW_GRANULE))
    n_cores = _tensorcores_per_chip()
    if n_cores > 1 and B >= n_cores * _ROW_GRANULE:
        # Multi-TC chips only (v7x): ensure every TensorCore gets >=1 step.
        tile = min(tile, _round_up(pl.cdiv(B, n_cores), _ROW_GRANULE))
    tile = max(_round_up(tile, _ROW_GRANULE), _ROW_GRANULE)

    # No wrapper-side padding: Pallas handles the partial final block; garbage
    # tail rows only affect output rows >= B, which are never written back.
    grid = (pl.cdiv(B, tile),)

    # ---- weights/biases (tiny, ~26 KiB): bf16 weights, f32 biases -------------
    w1_bf = w1.astype(jnp.bfloat16)
    w2_bf = w2.astype(jnp.bfloat16)
    w3_bf = w3.astype(jnp.bfloat16)
    b1_f = b1.astype(jnp.float32)
    b2_f = b2.astype(jnp.float32)
    b3_f = b3.astype(jnp.float32)

    # Constant-index BlockSpecs keep weights/biases VMEM-resident across all
    # grid steps; only the x tiles and output tiles are pipelined.
    def full(shape):
        nd = len(shape)
        return pl.BlockSpec(shape, lambda i: (0,) * nd)

    flops = 2 * B * (in_dim * hid + hid * hid + hid * out_dim)
    bytes_accessed = (
        B * in_dim * 4                                     # f32 x (read once)
        + (in_dim * hid + hid * hid + hid * out_dim) * 2   # bf16 weights
        + (2 * hid + out_dim) * 4                          # f32 biases
        + B * out_dim * 4                                  # f32 logits
    )
    cost = pl.CostEstimate(
        flops=flops, transcendentals=0, bytes_accessed=bytes_accessed
    )

    out = pl.pallas_call(
        mlp_kernel,
        out_shape=jax.ShapeDtypeStruct((B, out_dim), jnp.float32),
        grid_spec=pltpu.PrefetchScalarGridSpec(
            num_scalar_prefetch=0,
            grid=grid,
            in_specs=[
                pl.BlockSpec((tile, in_dim), lambda i: (i, 0)),  # x tile (f32)
                full(w1_bf.shape),
                full(b1_f.shape),
                full(w2_bf.shape),
                full(b2_f.shape),
                full(w3_bf.shape),
                full(b3_f.shape),
            ],
            out_specs=pl.BlockSpec((tile, out_dim), lambda i: (i, 0)),
        ),
        compiler_params=pltpu.CompilerParams(
            dimension_semantics=("parallel",)
        ),
        cost_estimate=cost,
    )(x, w1_bf, b1_f, w2_bf, b2_f, w3_bf, b3_f)

    return out


def init_params(key, input_size, hidden_size, output_size):
    """Deterministic synthetic parameters (shapes match the nn.Linear layers)."""
    k1, k2, k3, k4, k5, k6 = jax.random.split(key, 6)
    # (in, out) layout == transpose of torch nn.Linear.weight
    w1 = jax.random.normal(k1, (input_size, hidden_size), jnp.float32) * 0.1
    b1 = jax.random.normal(k2, (1, hidden_size), jnp.float32) * 0.1
    w2 = jax.random.normal(k3, (hidden_size, hidden_size), jnp.float32) * 0.1
    b2 = jax.random.normal(k4, (1, hidden_size), jnp.float32) * 0.1
    w3 = jax.random.normal(k5, (hidden_size, output_size), jnp.float32) * 0.1
    b3 = jax.random.normal(k6, (1, output_size), jnp.float32) * 0.1
    return (w1, b1, w2, b2, w3, b3)


def reference_forward(x, params):
    """Pure-JAX f32 reference matching the PyTorch forward semantics."""
    w1, b1, w2, b2, w3, b3 = params
    h = jnp.maximum(x @ w1 + b1, 0.0)
    h = jnp.maximum(h @ w2 + b2, 0.0)
    return h @ w3 + b3


if __name__ == "__main__":
    # Small shapes consistent with the module: features -> 64 hidden -> classes.
    # batch deliberately NOT a multiple of 16 to exercise the partial-block path.
    batch = 37
    input_size = 32       # stand-in for X_train.shape[1]
    hidden_size = 64
    output_size = 8       # stand-in for len(label_encoder.classes_)

    key = jax.random.PRNGKey(0)
    kx, kp = jax.random.split(key)
    x = jax.random.normal(kx, (batch, input_size), jnp.float32)
    params = init_params(kp, input_size, hidden_size, output_size)

    out = phonological_error_classifier(x, params)
    out = jax.block_until_ready(out)

    ref = reference_forward(x, params)
    assert out.shape == (batch, output_size)
    # bf16 matmul operands with f32 accumulation: allow ~1% error vs f32 ref
    assert jnp.allclose(out, ref, atol=5e-2, rtol=5e-2), "mismatch vs reference"

    print("KERNEL_OK")
</pallas_src>

<mosaic_0001>
module attributes {stable_mosaic.version = 11 : i64} {
  func.func @mlp_kernel(%arg0: i32, %arg1: memref<48x32xf32, #tpu.memory_space<vmem>>, %arg2: memref<32x64xbf16, #tpu.memory_space<vmem>>, %arg3: memref<1x64xf32, #tpu.memory_space<vmem>>, %arg4: memref<64x64xbf16, #tpu.memory_space<vmem>>, %arg5: memref<1x64xf32, #tpu.memory_space<vmem>>, %arg6: memref<64x8xbf16, #tpu.memory_space<vmem>>, %arg7: memref<1x8xf32, #tpu.memory_space<vmem>>, %arg8: memref<48x8xf32, #tpu.memory_space<vmem>>) attributes {dimension_semantics = [#tpu.dimension_semantics<parallel>], iteration_bounds = array<i64: 1>, scalar_prefetch = 0 : i64, scratch_operands = 0 : i64, tpu.core_type = #tpu.core_type<tc>, window_params = [{transform_indices = @transform_0, window_bounds = array<i64: 48, 32>}, {pipeline_mode = #tpu.pipeline_mode<synchronous>, transform_indices = @transform_1, window_bounds = array<i64: 32, 64>}, {pipeline_mode = #tpu.pipeline_mode<synchronous>, transform_indices = @transform_2, window_bounds = array<i64: 1, 64>}, {pipeline_mode = #tpu.pipeline_mode<synchronous>, transform_indices = @transform_3, window_bounds = array<i64: 64, 64>}, {pipeline_mode = #tpu.pipeline_mode<synchronous>, transform_indices = @transform_4, window_bounds = array<i64: 1, 64>}, {pipeline_mode = #tpu.pipeline_mode<synchronous>, transform_indices = @transform_5, window_bounds = array<i64: 64, 8>}, {pipeline_mode = #tpu.pipeline_mode<synchronous>, transform_indices = @transform_6, window_bounds = array<i64: 1, 8>}, {transform_indices = @transform_7, window_bounds = array<i64: 48, 8>}]} {
    %c0 = arith.constant 0 : index
    %c0_0 = arith.constant 0 : index
    %0 = vector.load %arg1[%c0, %c0_0] : memref<48x32xf32, #tpu.memory_space<vmem>>, vector<48x32xf32>
    %1 = arith.truncf %0 : vector<48x32xf32> to vector<48x32xbf16>
    %c0_1 = arith.constant 0 : index
    %c0_2 = arith.constant 0 : index
    %2 = vector.load %arg2[%c0_1, %c0_2] : memref<32x64xbf16, #tpu.memory_space<vmem>>, vector<32x64xbf16>
    %cst = arith.constant dense<0.000000e+00> : vector<48x64xf32>
    %3 = tpu.matmul %1, %2, %cst {dimension_numbers = #tpu.dot_dimension_numbers<[1], [0], [0], [1], [0, 0, 1, 1], [], []>} : vector<48x32xbf16>, vector<32x64xbf16>, vector<48x64xf32> -> vector<48x64xf32>
    %c0_3 = arith.constant 0 : index
    %c0_4 = arith.constant 0 : index
    %4 = vector.load %arg3[%c0_3, %c0_4] : memref<1x64xf32, #tpu.memory_space<vmem>>, vector<1x64xf32>
    %5 = vector.broadcast %4 : vector<1x64xf32> to vector<48x64xf32>
    %6 = arith.addf %3, %5 : vector<48x64xf32>
    %cst_5 = arith.constant 0.000000e+00 : f32
    %7 = vector.broadcast %cst_5 : f32 to vector<48x64xf32>
    %8 = arith.maximumf %6, %7 : vector<48x64xf32>
    %9 = arith.truncf %8 : vector<48x64xf32> to vector<48x64xbf16>
    %c0_6 = arith.constant 0 : index
    %c0_7 = arith.constant 0 : index
    %10 = vector.load %arg4[%c0_6, %c0_7] : memref<64x64xbf16, #tpu.memory_space<vmem>>, vector<64x64xbf16>
    %cst_8 = arith.constant dense<0.000000e+00> : vector<48x64xf32>
    %11 = tpu.matmul %9, %10, %cst_8 {dimension_numbers = #tpu.dot_dimension_numbers<[1], [0], [0], [1], [0, 0, 1, 1], [], []>} : vector<48x64xbf16>, vector<64x64xbf16>, vector<48x64xf32> -> vector<48x64xf32>
    %c0_9 = arith.constant 0 : index
    %c0_10 = arith.constant 0 : index
    %12 = vector.load %arg5[%c0_9, %c0_10] : memref<1x64xf32, #tpu.memory_space<vmem>>, vector<1x64xf32>
    %13 = vector.broadcast %12 : vector<1x64xf32> to vector<48x64xf32>
    %14 = arith.addf %11, %13 : vector<48x64xf32>
    %cst_11 = arith.constant 0.000000e+00 : f32
    %15 = vector.broadcast %cst_11 : f32 to vector<48x64xf32>
    %16 = arith.maximumf %14, %15 : vector<48x64xf32>
    %17 = arith.truncf %16 : vector<48x64xf32> to vector<48x64xbf16>
    %c0_12 = arith.constant 0 : index
    %c0_13 = arith.constant 0 : index
    %18 = vector.load %arg6[%c0_12, %c0_13] : memref<64x8xbf16, #tpu.memory_space<vmem>>, vector<64x8xbf16>
    %cst_14 = arith.constant dense<0.000000e+00> : vector<48x8xf32>
    %19 = tpu.matmul %17, %18, %cst_14 {dimension_numbers = #tpu.dot_dimension_numbers<[1], [0], [0], [1], [0, 0, 1, 1], [], []>} : vector<48x64xbf16>, vector<64x8xbf16>, vector<48x8xf32> -> vector<48x8xf32>
    %c0_15 = arith.constant 0 : index
    %c0_16 = arith.constant 0 : index
    %20 = vector.load %arg7[%c0_15, %c0_16] : memref<1x8xf32, #tpu.memory_space<vmem>>, vector<1x8xf32>
    %21 = vector.broadcast %20 : vector<1x8xf32> to vector<48x8xf32>
    %22 = arith.addf %19, %21 : vector<48x8xf32>
    %c0_17 = arith.constant 0 : index
    %c0_18 = arith.constant 0 : index
    %23 = vector.load %arg8[%c0_17, %c0_18] : memref<48x8xf32, #tpu.memory_space<vmem>>, vector<48x8xf32>
    tpu.vector_store %arg8[%c0_17, %c0_18], %22 {strides = array<i32>} : memref<48x8xf32, #tpu.memory_space<vmem>>, vector<48x8xf32>,
    return
  }
  func.func @transform_0(%arg0: i32) -> (i32, i32) {
    %c0_i32 = arith.constant 0 : i32
    %c0_i32_0 = arith.constant 0 : i32
    return %arg0, %c0_i32 : i32, i32
  }
  func.func @transform_1(%arg0: i32) -> (i32, i32) {
    %c0_i32 = arith.constant 0 : i32
    %c0_i32_0 = arith.constant 0 : i32
    %c0_i32_1 = arith.constant 0 : i32
    return %c0_i32, %c0_i32_0 : i32, i32
  }
  func.func @transform_2(%arg0: i32) -> (i32, i32) {
    %c0_i32 = arith.constant 0 : i32
    %c0_i32_0 = arith.constant 0 : i32
    %c0_i32_1 = arith.constant 0 : i32
    return %c0_i32, %c0_i32_0 : i32, i32
  }
  func.func @transform_3(%arg0: i32) -> (i32, i32) {
    %c0_i32 = arith.constant 0 : i32
    %c0_i32_0 = arith.constant 0 : i32
    %c0_i32_1 = arith.constant 0 : i32
    return %c0_i32, %c0_i32_0 : i32, i32
  }
  func.func @transform_4(%arg0: i32) -> (i32, i32) {
    %c0_i32 = arith.constant 0 : i32
    %c0_i32_0 = arith.constant 0 : i32
    %c0_i32_1 = arith.constant 0 : i32
    return %c0_i32, %c0_i32_0 : i32, i32
  }
  func.func @transform_5(%arg0: i32) -> (i32, i32) {
    %c0_i32 = arith.constant 0 : i32
    %c0_i32_0 = arith.constant 0 : i32
    %c0_i32_1 = arith.constant 0 : i32
    return %c0_i32, %c0_i32_0 : i32, i32
  }
  func.func @transform_6(%arg0: i32) -> (i32, i32) {
    %c0_i32 = arith.constant 0 : i32
    %c0_i32_0 = arith.constant 0 : i32
    %c0_i32_1 = arith.constant 0 : i32
    return %c0_i32, %c0_i32_0 : i32, i32
  }
  func.func @transform_7(%arg0: i32) -> (i32, i32) {
    %c0_i32 = arith.constant 0 : i32
    %c0_i32_0 = arith.constant 0 : i32
    return %arg0, %c0_i32 : i32, i32
  }
}

</mosaic_0001>

<bundles_post_ra>
// kernel: tpu_custom_call.1
= control target key start
LH: loop header
LB: loop body
LE: loop exit
PB: predicated region body
PF: predicated region fallthrough
CT: control target
= control target key end

     0   :  { %v532_v1 = vmov 0.0   ;;  %vm533_vm0 = vmmov 0   ;;  %vm59_vm1 = vcmask 261120   ;;  %vm174_vm2 = vcmask 523264   ;;  %s690_s0 = inlined_call_operand.vmem [shape: f32[37,32], index: 0, kind: input, shape index: {}]   ;;  %s691_s1 = inlined_call_operand.vmem [shape: bf16[32,64], index: 1, kind: input, shape index: {}]   ;;  %s692_s2 = inlined_call_operand.vmem [shape: f32[1,64], index: 2, kind: input, shape index: {}]   ;;  %s693_s3 = inlined_call_operand.vmem [shape: bf16[64,64], index: 3, kind: input, shape index: {}]   ;;  %s694_s4 = inlined_call_operand.vmem [shape: f32[1,64], index: 4, kind: input, shape index: {}]   ;;  %s695_s5 = inlined_call_operand.vmem [shape: bf16[64,8], index: 5, kind: input, shape index: {}]   ;;  %s696_s6 = inlined_call_operand.vmem [shape: f32[1,8], index: 6, kind: input, shape index: {}]   ;;  %s697_s7 = inlined_call_operand.vmem [shape: f32[37,8], index: 7, kind: output, shape index: {}]  }
   0x1   :  { %v522_v0 = vld [vmem:[%s691_s1 + $0x8] sm:$0xff]   ;;  %460 = vmatprep.subr.bf16.mxu0 %v532_v1  ;;  %516 = vmatprep.subr.bf16.mxu1 %v532_v1  ;;  %v523_v2 = vld [vmem:[%s691_s1] sm:$0xff]   ;;  %v524_v8 = vld [vmem:[%s693_s3 + $0x18] sm:$0xff]   ;;  %vm355_vm3 = vcmask 64512  }
   0x2   :  { %461 = vmatpush3.bf16.msra.mxu0 %v522_v0  ;;  %464 = vmatprep.mubr.msk.bf16.mxu0 %vm533_vm0, %v532_v1  ;;  %v27_v3 = vld [vmem:[%s690_s0] sm:$0xff]  ;;  %v28_v4 = vld [vmem:[%s690_s0 + $0x8] sm:$0xff]  ;;  %v29_v10 = vld [vmem:[%s690_s0 + $0x10] sm:$0xff] }
   0x3   :  { %462 = vmatprep.subr.bf16.mxu0 %v532_v1  ;;  %518 = vmatpush3.bf16.msra.mxu1 %v522_v0  ;;  %v31_v5 = vld [vmem:[%s690_s0 + $0x20] sm:$0xff]  ;;  %v32_v6 = vld [vmem:[%s690_s0 + $0x28] sm:$0xff]  ;;  %v33_v7 = vpack.c.bf16 %v28_v4, %v27_v3  ;;  %v30_v11 = vld [vmem:[%s690_s0 + $0x18] sm:$0xff] }
   0x4   :  { %517 = vmatprep.subr.bf16.mxu1 %v532_v1  ;;  %472 = vmatprep.mubr.msk.bf16.mxu1 %vm533_vm0, %v532_v1  ;;  %v35_v9 = vpack.c.bf16 %v32_v6, %v31_v5  ;;  %v34_v12 = vpack.c.bf16 %v30_v11, %v29_v10  ;;  %v525_v13 = vld [vmem:[%s693_s3 + $0x10] sm:$0xff]   ;;  %v526_v14 = vld [vmem:[%s693_s3 + $0x8] sm:$0xff]   ;;  %v527_v15 = vld [vmem:[%s693_s3] sm:$0xff]  }
   0x5   :  { %v528_v16 = vld [vmem:[%s695_s5 + $0x18] sm:$0xff]   ;;  %v529_v17 = vld [vmem:[%s695_s5 + $0x10] sm:$0xff]   ;;  %v419_v18 = vld [vmem:[%s692_s2] ss:$0 sm:$0xff] }
   0x6   :  { %463 = vmatpush3.bf16.msra.mxu0 %v523_v2  ;;  %v530_v46 = vld [vmem:[%s695_s5 + $0x8] sm:$0xff]   ;;  %v531_v47 = vld [vmem:[%s695_s5] sm:$0xff]  }
   0x7   :  { %519 = vmatpush3.bf16.msra.mxu1 %v523_v2  ;;  %496 = vmatprep.subr.bf16.mxu0 %v532_v1  ;;  %v425_v48 = vld [vmem:[%s694_s4] ss:$0 sm:$0xff] }
   0x8   :  { %476 = vmatprep.subr.bf16.mxu1 %v532_v1 }
   0x9   :  { %465 = vmatmul.mubr.msk.bf16.vlgmr.msra.gmra.mxu0 %vm59_vm1, %v33_v7 }
   0xa   :  { %468 = vmatprep.mubr.msk.bf16.mxu0 %vm533_vm0, %v532_v1  ;;  %473 = vmatmul.mubr.msk.bf16.vlgmr.msra.gmra.mxu1 %vm59_vm1, %v35_v9 }
   0xb   :  { %477 = vmatpush3.bf16.msra.mxu1 %v524_v8  ;;  %484 = vmatprep.mubr.msk.bf16.mxu1 %vm533_vm0, %v532_v1 }
   0xc   :  { %478 = vmatprep.subr.bf16.mxu1 %v532_v1  ;;  %497 = vmatpush3.bf16.msra.mxu0 %v528_v16 }
   0xd   :  { %498 = vmatprep.subr.bf16.mxu0 %v532_v1 }
   0xf   :  { %479 = vmatpush3.bf16.msra.mxu1 %v525_v13  ;;  %v433_v13 = vld [vmem:[%s696_s6] ss:$0 sm:$0xff] }
  0x10   :  { %480 = vmatprep.subr.bf16.mxu1 %v532_v1  ;;  %499 = vmatpush3.bf16.msra.mxu0 %v529_v17 }
  0x11   :  { %469 = vmatmul.mubr.msk.bf16.gmra.mxu0 %vm59_vm1, %v34_v12  ;;  %500 = vmatprep.subr.bf16.mxu0 %v532_v1 }
  0x12   :  { %504 = vmatprep.mubr.msk.bf16.mxu0 %vm533_vm0, %v532_v1 }
  0x13   :  { %481 = vmatpush3.bf16.msra.mxu1 %v526_v14 }
  0x14   :  { %482 = vmatprep.subr.bf16.mxu1 %v532_v1  ;;  %501 = vmatpush3.bf16.msra.mxu0 %v530_v46 }
  0x15   :  { %502 = vmatprep.subr.bf16.mxu0 %v532_v1 }
  0x17   :  { %483 = vmatpush3.bf16.msra.mxu1 %v527_v15 }
  0x18   :  { %503 = vmatpush3.bf16.msra.mxu0 %v531_v47 }
  0xc9   :  { %v103_v19 = vpop.f32.mrf.mxu0 }
  0xca   :  { %v119_v20 = vpop.f32.mrf.mxu1  ;;  %v104_v22 = vadd.f32 %v419_v18, %v103_v19 }
  0xcb   :  { %v466_v21 = vpop.f32.mrf.mxu0  ;;  %v120_v40 = vadd.f32 %v419_v18, %v119_v20 }
  0xcc   :  { %v474_v23 = vpop.f32.mrf.mxu1  ;;  %v126_v28 = vmax.f32 %v104_v22, 0.0 }
  0xcd   :  { %v106_v24 = vpop.f32.mrf.mxu0  ;;  %v130_v43 = vmax.f32 %v120_v40, 0.0 }
  0xce   :  { %v107_v25 = vadd.f32 %v419_v18, %v106_v24  ;;  %v122_v26 = vpop.f32.mrf.mxu1 }
  0xcf   :  { %v467_v27 = vpop.f32.mrf.mxu0  ;;  %v123_v42 = vadd.f32 %v419_v18, %v122_v26 }
  0xd0   :  { %v127_v29 = vmax.f32 %v107_v25, 0.0  ;;  %v475_v30 = vpop.f32.mrf.mxu1 }
  0xd1   :  { %v111_v31 = vpop.f32.mrf.mxu0  ;;  %v131_v44 = vmax.f32 %v123_v42, 0.0 }
  0xd2   :  { %v132_v32 = vpack.c.bf16 %v127_v29, %v126_v28  ;;  %v112_v34 = vadd.f32 %v419_v18, %v111_v31 }
  0xd3   :  { %v470_v33 = vpop.f32.mrf.mxu0  ;;  %v134_v45 = vpack.c.bf16 %v131_v44, %v130_v43 }
  0xd4   :  { %485 = vmatmul.mubr.msk.bf16.vlgmr.msra.gmra.mxu1 %vm174_vm2, %v132_v32  ;;  %v128_v38 = vmax.f32 %v112_v34, 0.0 }
  0xd5   :  { %v114_v35 = vpop.f32.mrf.mxu0  ;;  %488 = vmatprep.mubr.msk.bf16.mxu1 %vm533_vm0, %v532_v1 }
  0xd6   :  { %v115_v36 = vadd.f32 %v419_v18, %v114_v35 }
  0xd7   :  { %v471_v37 = vpop.f32.mrf.mxu0 }
  0xd8   :  { %v129_v39 = vmax.f32 %v115_v36, 0.0 }
  0xda   :  { %v133_v41 = vpack.c.bf16 %v129_v39, %v128_v38 }
  0xdc   :  { %489 = vmatmul.mubr.msk.bf16.gmra.mxu1 %vm174_vm2, %v133_v41 }
  0xdd   :  { %492 = vmatprep.mubr.msk.bf16.mxu1 %vm533_vm0, %v532_v1 }
  0xe4   :  { %493 = vmatmul.mubr.msk.bf16.gmra.mxu1 %vm174_vm2, %v134_v45 }
 0x194   :  { %v218_v49 = vpop.f32.mrf.mxu1 }
 0x195   :  { %v219_v51 = vadd.f32 %v425_v48, %v218_v49 }
 0x196   :  { %v486_v50 = vpop.f32.mrf.mxu1 }
 0x197   :  { %v241_v55 = vmax.f32 %v219_v51, 0.0 }
 0x198   :  { %v221_v52 = vpop.f32.mrf.mxu1 }
 0x199   :  { %v222_v53 = vadd.f32 %v425_v48, %v221_v52 }
 0x19a   :  { %v487_v54 = vpop.f32.mrf.mxu1 }
 0x19b   :  { %v242_v56 = vmax.f32 %v222_v53, 0.0 }
 0x19c   :  { %v226_v57 = vpop.f32.mrf.mxu1 }
 0x19d   :  { %v247_v58 = vpack.c.bf16 %v242_v56, %v241_v55  ;;  %v227_v60 = vadd.f32 %v425_v48, %v226_v57 }
 0x19e   :  { %v490_v59 = vpop.f32.mrf.mxu1 }
 0x19f   :  { %505 = vmatmul.mubr.msk.bf16.vlgmr.msra.gmra.mxu0 %vm174_vm2, %v247_v58  ;;  %v243_v0 = vmax.f32 %v227_v60, 0.0 }
 0x1a0   :  { %v229_v61 = vpop.f32.mrf.mxu1  ;;  %508 = vmatprep.mubr.msk.bf16.mxu0 %vm533_vm0, %v532_v1 }
 0x1a1   :  { %v230_v62 = vadd.f32 %v425_v48, %v229_v61 }
 0x1a2   :  { %v491_v63 = vpop.f32.mrf.mxu1 }
 0x1a3   :  { %v244_v2 = vmax.f32 %v230_v62, 0.0 }
 0x1a4   :  { %v234_v3 = vpop.f32.mrf.mxu1 }
 0x1a5   :  { %v248_v4 = vpack.c.bf16 %v244_v2, %v243_v0  ;;  %v235_v6 = vadd.f32 %v425_v48, %v234_v3 }
 0x1a6   :  { %v494_v5 = vpop.f32.mrf.mxu1 }
 0x1a7   :  { %509 = vmatmul.mubr.msk.bf16.gmra.mxu0 %vm174_vm2, %v248_v4  ;;  %v245_v10 = vmax.f32 %v235_v6, 0.0 }
 0x1a8   :  { %v237_v7 = vpop.f32.mrf.mxu1  ;;  %512 = vmatprep.mubr.msk.bf16.mxu0 %vm533_vm0, %v532_v1 }
 0x1a9   :  { %v238_v8 = vadd.f32 %v425_v48, %v237_v7 }
 0x1aa   :  { %v495_v9 = vpop.f32.mrf.mxu1 }
 0x1ab   :  { %v246_v11 = vmax.f32 %v238_v8, 0.0 }
 0x1ad   :  { %v249_v12 = vpack.c.bf16 %v246_v11, %v245_v10 }
 0x1af   :  { %513 = vmatmul.mubr.msk.bf16.gmra.mxu0 %vm174_vm2, %v249_v12 }
 0x25f   :  { %v332_v14 = vpop.f32.mrf.mxu0 }
 0x260   :  { %v333_v15 = vadd.f32 %v433_v13, %v332_v14 }
 0x261   :  { %v506_v16 = vpop.f32.mrf.mxu0 }
 0x262   :  { %356 = vst.msk [vmem:[#allocation2] sm:$0xff] %vm355_vm3, %v333_v15 }
 0x263   :  { %v335_v17 = vpop.f32.mrf.mxu0 }
 0x264   :  { %v336_v18 = vadd.f32 %v433_v13, %v335_v17 }
 0x265   :  { %v507_v1 = vpop.f32.mrf.mxu0 }
 0x266   :  { %357 = vst.msk [vmem:[#allocation2 + $0x8] sm:$0xff] %vm355_vm3, %v336_v18 }
 0x267   :  { %v340_v19 = vpop.f32.mrf.mxu0 }
 0x268   :  { %v341_v20 = vadd.f32 %v433_v13, %v340_v19 }
 0x269   :  { %v400_v21 = vld [vmem:[#allocation2] sm:$0xff]  ;;  %v510_v22 = vpop.f32.mrf.mxu0 }
 0x26a   :  { %401 = vst [vmem:[%s697_s7] sm:$0xff] %v400_v21  ;;  %358 = vst.msk [vmem:[#allocation2 + $0x10] sm:$0xff] %vm355_vm3, %v341_v20 }
 0x26b   :  { %v343_v23 = vpop.f32.mrf.mxu0 }
 0x26c   :  { %v344_v24 = vadd.f32 %v433_v13, %v343_v23 }
 0x26d   :  { %v402_v25 = vld [vmem:[#allocation2 + $0x8] sm:$0xff]  ;;  %v511_v26 = vpop.f32.mrf.mxu0 }
 0x26e   :  { %403 = vst [vmem:[%s697_s7 + $0x8] sm:$0xff] %v402_v25  ;;  %359 = vst.msk [vmem:[#allocation2 + $0x18] sm:$0xff] %vm355_vm3, %v344_v24 }
 0x26f   :  { %v348_v27 = vpop.f32.mrf.mxu0 }
 0x270   :  { %v349_v28 = vadd.f32 %v433_v13, %v348_v27 }
 0x271   :  { %v404_v29 = vld [vmem:[#allocation2 + $0x10] sm:$0xff]  ;;  %v514_v30 = vpop.f32.mrf.mxu0 }
 0x272   :  { %405 = vst [vmem:[%s697_s7 + $0x10] sm:$0xff] %v404_v29  ;;  %360 = vst.msk [vmem:[#allocation2 + $0x20] sm:$0xff] %vm355_vm3, %v349_v28 }
 0x273   :  { %v351_v31 = vpop.f32.mrf.mxu0 }
 0x275   :  { %v406_v32 = vld [vmem:[#allocation2 + $0x18] sm:$0xff]  ;;  %v515_v33 = vpop.f32.mrf.mxu0 }
 0x276   :  { %407 = vst [vmem:[%s697_s7 + $0x18] sm:$0xff] %v406_v32 }
 0x279   :  { %v408_v34 = vld [vmem:[#allocation2 + $0x20] sm:$0xff] }
 0x27a   :  { %409 = vst [vmem:[%s697_s7 + $0x20] sm:$0xff] %v408_v34 }

</bundles_post_ra>
